<compile_context>
chip_gen: v7x
topology: tpu7x:2x2x1
jax: 0.10.0
libtpu: 0.0.40
codegen_flags: <defaults>
</compile_context>

<pallas_src>
import jax
import jax.numpy as jnp
from jax import lax
from jax.experimental import pallas as pl
from jax.experimental.pallas import tpu as pltpu

LN_EPS = 1e-5  # PyTorch nn.LayerNorm default


def _round_up(x, m):
    return (x + m - 1) // m * m


def _vmem_capacity_bytes():
    """Physical VMEM per core; conservative 64 MiB (v7x) fallback."""
    try:
        info = pltpu.get_tpu_info()
        cap = getattr(info, "vmem_capacity_bytes", None)
        if cap:
            return int(cap)
    except Exception:
        pass
    return 64 << 20


def _pick_tile_k(hidden, granule=128, max_tile=512):
    """Largest divisor of `hidden` that is a multiple of `granule` and <= max_tile.

    Falls back to `hidden` itself (single K chunk) only when no such divisor
    exists (e.g. hidden not a multiple of 128).
    """
    if hidden <= max_tile:
        return hidden
    best = None
    t = granule
    while t <= max_tile:
        if hidden % t == 0:
            best = t
        t += granule
    return best if best is not None else hidden


def _resident_vmem_bytes(tile_m, d_model, hidden, mxu_bytes, out_bytes):
    # Conservative: weights counted double-buffered (Pallas allocates 2 buffers
    # per input by default, even though constant index_maps mean one DMA).
    return (
        2 * tile_m * d_model * 4                # x tile (double buffered, f32)
        + 2 * tile_m * d_model * out_bytes      # out tile (double buffered)
        + 2 * 2 * d_model * hidden * mxu_bytes  # w1 + w2 (resident)
        + 2 * (hidden + 3 * d_model) * 4        # b1, b2, gamma, beta
        + tile_m * hidden * 4                   # h intermediate (f32)
        + 2 * tile_m * d_model * 4              # y / LayerNorm temporaries
    )


def _ktiled_vmem_bytes(tile_m, tile_k, d_model, hidden, mxu_bytes, out_bytes):
    del hidden
    return (
        2 * tile_m * d_model * 4                # x tile
        + 2 * tile_m * d_model * out_bytes      # out tile
        + 2 * d_model * tile_k * mxu_bytes      # w1 chunk (double buffered)
        + 2 * tile_k * d_model * mxu_bytes      # w2 chunk (double buffered)
        + 2 * (tile_k + 3 * d_model) * 4        # bias/gamma/beta chunks
        + tile_m * d_model * 4                  # f32 accumulator scratch
        + tile_m * d_model * mxu_bytes          # hoisted x cast scratch
        + tile_m * tile_k * 4                   # h intermediate
        + tile_m * d_model * 4                  # LayerNorm temporaries
    )


def _layernorm_store(y, gamma_ref, beta_ref, o_ref):
    # One-pass LayerNorm: center once, reuse for variance and normalization.
    mean = jnp.mean(y, axis=-1, keepdims=True)
    yc = y - mean
    var = jnp.mean(yc * yc, axis=-1, keepdims=True)
    y_hat = yc * lax.rsqrt(var + LN_EPS)
    o_ref[...] = (y_hat * gamma_ref[...] + beta_ref[...]).astype(o_ref.dtype)


def _make_resident_kernel(mxu_dtype):
    """Weights-resident path: whole FFN + residual + LayerNorm per token tile."""

    def kernel(x_ref, w1_ref, b1_ref, w2_ref, b2_ref, gamma_ref, beta_ref, o_ref):
        x = x_ref[...]                                      # (TM, d_model) f32
        h = jnp.dot(x.astype(mxu_dtype), w1_ref[...],
                    preferred_element_type=jnp.float32)
        h = jnp.maximum(h + b1_ref[...], 0.0)               # bias + ReLU in f32
        y = jnp.dot(h.astype(mxu_dtype), w2_ref[...],
                    preferred_element_type=jnp.float32)
        y = y + b2_ref[...] + x                              # residual in f32
        _layernorm_store(y, gamma_ref, beta_ref, o_ref)

    return kernel


def _make_ktiled_kernel(mxu_dtype):
    """Hidden-dim (K) tiled path with an f32 VMEM accumulator (P3 pattern)."""

    def kernel(x_ref, w1_ref, b1_ref, w2_ref, b2_ref, gamma_ref, beta_ref,
               o_ref, acc_ref, xq_ref):
        k = pl.program_id(1)

        @pl.when(k == 0)
        def _init():
            acc_ref[...] = jnp.zeros_like(acc_ref)
            # Hoisted cast: cast the x tile to the MXU dtype once per M tile and
            # reuse it for every k step (saves repeated VPU cast work).
            xq_ref[...] = x_ref[...].astype(xq_ref.dtype)

        h = jnp.dot(xq_ref[...], w1_ref[...],
                    preferred_element_type=jnp.float32)
        h = jnp.maximum(h + b1_ref[...], 0.0)
        acc_ref[...] += jnp.dot(h.astype(mxu_dtype), w2_ref[...],
                                preferred_element_type=jnp.float32)

        @pl.when(k == pl.num_programs(1) - 1)
        def _finalize():
            y = acc_ref[...] + b2_ref[...] + x_ref[...]      # residual in f32
            _layernorm_store(y, gamma_ref, beta_ref, o_ref)

    return kernel


def ffn_forward(x, w1, b1, w2, b2, gamma, beta, *,
                mxu_dtype=jnp.bfloat16, out_dtype=None,
                tile_m=None, tile_k=None, force_k_tiling=False):
    """x: (..., d_model).  w1: (d_model, hidden), w2: (hidden, d_model)."""
    orig_shape = x.shape
    d_model = orig_shape[-1]
    hidden = w1.shape[1]
    out_dtype = out_dtype if out_dtype is not None else x.dtype

    x2 = x.reshape(-1, d_model).astype(jnp.float32)
    n = x2.shape[0]

    mxu_bytes = jnp.dtype(mxu_dtype).itemsize
    out_bytes = jnp.dtype(out_dtype).itemsize

    vmem_cap = _vmem_capacity_bytes()          # 64 MiB on v7x, 128 MiB on v5e/v6e
    vmem_budget = int(vmem_cap * 0.85)         # leave compiler headroom

    # Token (M) tiling: pick the largest tile that fits VMEM, but keep >= 2 M
    # tiles when possible so the "parallel" axis shards across both v7x cores.
    tile_m_cap = max(8, _round_up(-(-n // 2), 8))
    if tile_m is not None:
        tile_m_candidates = [max(8, _round_up(tile_m, 8))]
    else:
        tile_m_candidates = [1024, 512, 256, 128, 64, 32, 16, 8]

    def _eff(cand):
        return cand if tile_m is not None else min(cand, tile_m_cap)

    mode, tm, tk, vmem_est = None, None, hidden, 0
    if not force_k_tiling:
        for cand in tile_m_candidates:
            tm_c = _eff(cand)
            est = _resident_vmem_bytes(tm_c, d_model, hidden, mxu_bytes, out_bytes)
            if est <= vmem_budget:
                mode, tm, tk, vmem_est = "resident", tm_c, hidden, est
                break

    if mode is None:
        mode = "ktiled"
        if tile_k is not None and hidden % tile_k == 0:
            tk = tile_k
        else:
            tk = _pick_tile_k(hidden)
        for cand in tile_m_candidates:
            tm_c = _eff(cand)
            est = _ktiled_vmem_bytes(tm_c, tk, d_model, hidden, mxu_bytes, out_bytes)
            if est <= vmem_budget:
                tm, vmem_est = tm_c, est
                break
        if tm is None:  # best effort: smallest candidate even if over budget
            tm = _eff(tile_m_candidates[-1])
            vmem_est = _ktiled_vmem_bytes(tm, tk, d_model, hidden, mxu_bytes, out_bytes)

    # Pad tokens up to a tile multiple.  Padded (zero) rows flow through the
    # full FFN + LayerNorm (numerically harmless: var + eps > 0) and are sliced
    # off before returning — they must never be written back anywhere else.
    n_pad = _round_up(max(n, tm), tm)
    if n_pad != n:
        x2 = jnp.pad(x2, ((0, n_pad - n), (0, 0)))
    num_m = n_pad // tm

    w1_c = w1.astype(mxu_dtype)
    w2_c = w2.astype(mxu_dtype)
    b1_2d = b1.reshape(1, hidden).astype(jnp.float32)
    b2_2d = b2.reshape(1, d_model).astype(jnp.float32)
    gamma_2d = gamma.reshape(1, d_model).astype(jnp.float32)
    beta_2d = beta.reshape(1, d_model).astype(jnp.float32)

    vmem_limit = int(min(vmem_cap, max(vmem_est + (8 << 20), 32 << 20)))

    # Accurate traffic: weights are read once when resident, num_m times when
    # K-tiled (re-streamed per M tile).
    weight_bytes = 2 * d_model * hidden * mxu_bytes
    weight_traffic = weight_bytes if mode == "resident" else weight_bytes * num_m
    cost = pl.CostEstimate(
        flops=4 * n_pad * d_model * hidden,
        transcendentals=n_pad,  # one rsqrt per row
        bytes_accessed=(n_pad * d_model * 4          # x read
                        + n_pad * d_model * out_bytes  # out write
                        + weight_traffic
                        + (hidden + 3 * d_model) * 4),
    )

    if mode == "resident":
        # Weights DMA'd once (constant index_maps) and kept resident in VMEM.
        # TODO(synk): pipeline_mode=pl.Buffered(1) on the constant operands would
        # reclaim their second pipeline buffer; left off to keep lowering simple.
        out = pl.pallas_call(
            _make_resident_kernel(mxu_dtype),
            out_shape=jax.ShapeDtypeStruct((n_pad, d_model), out_dtype),
            grid_spec=pltpu.PrefetchScalarGridSpec(
                num_scalar_prefetch=0,
                grid=(num_m,),
                in_specs=[
                    pl.BlockSpec((tm, d_model), lambda i: (i, 0)),       # x tile
                    pl.BlockSpec((d_model, hidden), lambda i: (0, 0)),   # w1
                    pl.BlockSpec((1, hidden), lambda i: (0, 0)),         # b1
                    pl.BlockSpec((hidden, d_model), lambda i: (0, 0)),   # w2
                    pl.BlockSpec((1, d_model), lambda i: (0, 0)),        # b2
                    pl.BlockSpec((1, d_model), lambda i: (0, 0)),        # gamma
                    pl.BlockSpec((1, d_model), lambda i: (0, 0)),        # beta
                ],
                out_specs=pl.BlockSpec((tm, d_model), lambda i: (i, 0)),
            ),
            compiler_params=pltpu.CompilerParams(
                dimension_semantics=("parallel",),
                vmem_limit_bytes=vmem_limit,
            ),
            cost_estimate=cost,
        )(x2, w1_c, b1_2d, w2_c, b2_2d, gamma_2d, beta_2d)
    else:
        num_k = hidden // tk
        out = pl.pallas_call(
            _make_ktiled_kernel(mxu_dtype),
            out_shape=jax.ShapeDtypeStruct((n_pad, d_model), out_dtype),
            grid_spec=pltpu.PrefetchScalarGridSpec(
                num_scalar_prefetch=0,
                grid=(num_m, num_k),
                in_specs=[
                    pl.BlockSpec((tm, d_model), lambda i, k: (i, 0)),    # x tile
                    pl.BlockSpec((d_model, tk), lambda i, k: (0, k)),    # w1 chunk
                    pl.BlockSpec((1, tk), lambda i, k: (0, k)),          # b1 chunk
                    pl.BlockSpec((tk, d_model), lambda i, k: (k, 0)),    # w2 chunk
                    pl.BlockSpec((1, d_model), lambda i, k: (0, 0)),     # b2
                    pl.BlockSpec((1, d_model), lambda i, k: (0, 0)),     # gamma
                    pl.BlockSpec((1, d_model), lambda i, k: (0, 0)),     # beta
                ],
                out_specs=pl.BlockSpec((tm, d_model), lambda i, k: (i, 0)),
                scratch_shapes=[
                    pltpu.VMEM((tm, d_model), jnp.float32),   # f32 accumulator
                    pltpu.VMEM((tm, d_model), mxu_dtype),     # hoisted x cast
                ],
            ),
            compiler_params=pltpu.CompilerParams(
                dimension_semantics=("parallel", "arbitrary"),
                vmem_limit_bytes=vmem_limit,
            ),
            cost_estimate=cost,
        )(x2, w1_c, b1_2d, w2_c, b2_2d, gamma_2d, beta_2d)

    return out[:n].reshape(orig_shape)


def xavier_uniform(key, fan_in, fan_out, dtype=jnp.float32):
    limit = (6.0 / (fan_in + fan_out)) ** 0.5
    return jax.random.uniform(key, (fan_in, fan_out), dtype, -limit, limit)


def reference_ffn(x, w1, b1, w2, b2, gamma, beta):
    h = jnp.maximum(x @ w1 + b1, 0.0)
    y = h @ w2 + b2 + x
    mean = jnp.mean(y, axis=-1, keepdims=True)
    var = jnp.mean((y - mean) ** 2, axis=-1, keepdims=True)
    return (y - mean) / jnp.sqrt(var + LN_EPS) * gamma + beta


if __name__ == "__main__":
    key = jax.random.PRNGKey(0)
    keys = jax.random.split(key, 6)

    # --- Config 1: small shapes implied by the module (resident-weights path) ---
    batch, seq, d_model, hidden = 2, 8, 32, 64
    x = jax.random.normal(keys[0], (batch, seq, d_model), jnp.float32)
    w1 = xavier_uniform(keys[1], d_model, hidden)
    b1 = jnp.zeros((hidden,), jnp.float32)
    w2 = xavier_uniform(keys[2], hidden, d_model)
    b2 = jnp.zeros((d_model,), jnp.float32)
    gamma = jnp.ones((d_model,), jnp.float32)
    beta = jnp.zeros((d_model,), jnp.float32)

    ref = reference_ffn(x, w1, b1, w2, b2, gamma, beta)

    # Exact-math validation path (f32 MXU operands).  Note: relies on Mosaic's
    # f32 matmul precision; tolerance kept slightly loose vs. the bf16 path.
    out_f32 = jax.block_until_ready(
        ffn_forward(x, w1, b1, w2, b2, gamma, beta, mxu_dtype=jnp.float32))
    assert out_f32.shape == x.shape
    assert jnp.allclose(out_f32, ref, atol=1e-4, rtol=1e-4), "f32 resident mismatch"

    # Production path (bf16 MXU operands, f32 accumulation).
    out_bf16 = jax.block_until_ready(
        ffn_forward(x, w1, b1, w2, b2, gamma, beta, mxu_dtype=jnp.bfloat16))
    assert out_bf16.shape == x.shape
    assert jnp.allclose(out_bf16, ref, atol=5e-2, rtol=5e-2), "bf16 resident mismatch"

    # --- Config 2: exercise the K-tiled fallback (multi-step reduction axis) ---
    d2, h2 = 128, 512
    x2_in = jax.random.normal(keys[3], (batch, seq, d2), jnp.float32)
    w1b = xavier_uniform(keys[4], d2, h2)
    b1b = jnp.zeros((h2,), jnp.float32)
    w2b = xavier_uniform(keys[5], h2, d2)
    b2b = jnp.zeros((d2,), jnp.float32)
    g2 = jnp.ones((d2,), jnp.float32)
    be2 = jnp.zeros((d2,), jnp.float32)

    ref2 = reference_ffn(x2_in, w1b, b1b, w2b, b2b, g2, be2)

    out_kt_f32 = jax.block_until_ready(
        ffn_forward(x2_in, w1b, b1b, w2b, b2b, g2, be2,
                    mxu_dtype=jnp.float32, tile_k=256, force_k_tiling=True))
    assert out_kt_f32.shape == x2_in.shape
    assert jnp.allclose(out_kt_f32, ref2, atol=1e-4, rtol=1e-4), "f32 K-tiled mismatch"

    out_kt_bf16 = jax.block_until_ready(
        ffn_forward(x2_in, w1b, b1b, w2b, b2b, g2, be2,
                    mxu_dtype=jnp.bfloat16, tile_k=256, force_k_tiling=True))
    assert jnp.allclose(out_kt_bf16, ref2, atol=5e-2, rtol=5e-2), "bf16 K-tiled mismatch"

    print("KERNEL_OK")
</pallas_src>

<mosaic_0001>
module attributes {stable_mosaic.version = 11 : i64} {
  func.func @kernel(%arg0: i32, %arg1: memref<8x32xf32, #tpu.memory_space<vmem>>, %arg2: memref<32x64xf32, #tpu.memory_space<vmem>>, %arg3: memref<1x64xf32, #tpu.memory_space<vmem>>, %arg4: memref<64x32xf32, #tpu.memory_space<vmem>>, %arg5: memref<1x32xf32, #tpu.memory_space<vmem>>, %arg6: memref<1x32xf32, #tpu.memory_space<vmem>>, %arg7: memref<1x32xf32, #tpu.memory_space<vmem>>, %arg8: memref<8x32xf32, #tpu.memory_space<vmem>>) attributes {dimension_semantics = [#tpu.dimension_semantics<parallel>], iteration_bounds = array<i64: 2>, scalar_prefetch = 0 : i64, scratch_operands = 0 : i64, tpu.core_type = #tpu.core_type<tc>, window_params = [{transform_indices = @transform_0, window_bounds = array<i64: 8, 32>}, {pipeline_mode = #tpu.pipeline_mode<synchronous>, transform_indices = @transform_1, window_bounds = array<i64: 32, 64>}, {pipeline_mode = #tpu.pipeline_mode<synchronous>, transform_indices = @transform_2, window_bounds = array<i64: 1, 64>}, {pipeline_mode = #tpu.pipeline_mode<synchronous>, transform_indices = @transform_3, window_bounds = array<i64: 64, 32>}, {pipeline_mode = #tpu.pipeline_mode<synchronous>, transform_indices = @transform_4, window_bounds = array<i64: 1, 32>}, {pipeline_mode = #tpu.pipeline_mode<synchronous>, transform_indices = @transform_5, window_bounds = array<i64: 1, 32>}, {pipeline_mode = #tpu.pipeline_mode<synchronous>, transform_indices = @transform_6, window_bounds = array<i64: 1, 32>}, {transform_indices = @transform_7, window_bounds = array<i64: 8, 32>}]} {
    %c0 = arith.constant 0 : index
    %c0_0 = arith.constant 0 : index
    %0 = vector.load %arg1[%c0, %c0_0] : memref<8x32xf32, #tpu.memory_space<vmem>>, vector<8x32xf32>
    %c0_1 = arith.constant 0 : index
    %c0_2 = arith.constant 0 : index
    %1 = vector.load %arg2[%c0_1, %c0_2] : memref<32x64xf32, #tpu.memory_space<vmem>>, vector<32x64xf32>
    %cst = arith.constant dense<0.000000e+00> : vector<8x64xf32>
    %2 = tpu.matmul %0, %1, %cst {dimension_numbers = #tpu.dot_dimension_numbers<[1], [0], [0], [1], [0, 0, 1, 1], [], []>} : vector<8x32xf32>, vector<32x64xf32>, vector<8x64xf32> -> vector<8x64xf32>
    %c0_3 = arith.constant 0 : index
    %c0_4 = arith.constant 0 : index
    %3 = vector.load %arg3[%c0_3, %c0_4] : memref<1x64xf32, #tpu.memory_space<vmem>>, vector<1x64xf32>
    %4 = vector.broadcast %3 : vector<1x64xf32> to vector<8x64xf32>
    %5 = arith.addf %2, %4 : vector<8x64xf32>
    %cst_5 = arith.constant 0.000000e+00 : f32
    %6 = vector.broadcast %cst_5 : f32 to vector<8x64xf32>
    %7 = arith.maximumf %5, %6 : vector<8x64xf32>
    %c0_6 = arith.constant 0 : index
    %c0_7 = arith.constant 0 : index
    %8 = vector.load %arg4[%c0_6, %c0_7] : memref<64x32xf32, #tpu.memory_space<vmem>>, vector<64x32xf32>
    %cst_8 = arith.constant dense<0.000000e+00> : vector<8x32xf32>
    %9 = tpu.matmul %7, %8, %cst_8 {dimension_numbers = #tpu.dot_dimension_numbers<[1], [0], [0], [1], [0, 0, 1, 1], [], []>} : vector<8x64xf32>, vector<64x32xf32>, vector<8x32xf32> -> vector<8x32xf32>
    %c0_9 = arith.constant 0 : index
    %c0_10 = arith.constant 0 : index
    %10 = vector.load %arg5[%c0_9, %c0_10] : memref<1x32xf32, #tpu.memory_space<vmem>>, vector<1x32xf32>
    %11 = vector.broadcast %10 : vector<1x32xf32> to vector<8x32xf32>
    %12 = arith.addf %9, %11 : vector<8x32xf32>
    %13 = arith.addf %12, %0 : vector<8x32xf32>
    %cst_11 = arith.constant dense<0.000000e+00> : vector<8xf32>
    %14 = vector.multi_reduction <add>, %13, %cst_11 [1] : vector<8x32xf32> to vector<8xf32>
    %15 = vector.shape_cast %14 : vector<8xf32> to vector<8x1xf32>
    %cst_12 = arith.constant 3.200000e+01 : f32
    %16 = vector.broadcast %cst_12 : f32 to vector<8x1xf32>
    %17 = arith.divf %15, %16 : vector<8x1xf32>
    %18 = vector.broadcast %17 : vector<8x1xf32> to vector<8x32xf32>
    %19 = arith.subf %13, %18 : vector<8x32xf32>
    %20 = arith.mulf %19, %19 : vector<8x32xf32>
    %cst_13 = arith.constant dense<0.000000e+00> : vector<8xf32>
    %21 = vector.multi_reduction <add>, %20, %cst_13 [1] : vector<8x32xf32> to vector<8xf32>
    %22 = vector.shape_cast %21 : vector<8xf32> to vector<8x1xf32>
    %cst_14 = arith.constant 3.200000e+01 : f32
    %23 = vector.broadcast %cst_14 : f32 to vector<8x1xf32>
    %24 = arith.divf %22, %23 : vector<8x1xf32>
    %cst_15 = arith.constant 9.99999974E-6 : f32
    %25 = vector.broadcast %cst_15 : f32 to vector<8x1xf32>
    %26 = arith.addf %24, %25 : vector<8x1xf32>
    %27 = math.rsqrt %26 : vector<8x1xf32>
    %28 = vector.broadcast %27 : vector<8x1xf32> to vector<8x32xf32>
    %29 = arith.mulf %19, %28 : vector<8x32xf32>
    %c0_16 = arith.constant 0 : index
    %c0_17 = arith.constant 0 : index
    %30 = vector.load %arg6[%c0_16, %c0_17] : memref<1x32xf32, #tpu.memory_space<vmem>>, vector<1x32xf32>
    %31 = vector.broadcast %30 : vector<1x32xf32> to vector<8x32xf32>
    %32 = arith.mulf %29, %31 : vector<8x32xf32>
    %c0_18 = arith.constant 0 : index
    %c0_19 = arith.constant 0 : index
    %33 = vector.load %arg7[%c0_18, %c0_19] : memref<1x32xf32, #tpu.memory_space<vmem>>, vector<1x32xf32>
    %34 = vector.broadcast %33 : vector<1x32xf32> to vector<8x32xf32>
    %35 = arith.addf %32, %34 : vector<8x32xf32>
    %c0_20 = arith.constant 0 : index
    %c0_21 = arith.constant 0 : index
    %36 = vector.load %arg8[%c0_20, %c0_21] : memref<8x32xf32, #tpu.memory_space<vmem>>, vector<8x32xf32>
    tpu.vector_store %arg8[%c0_20, %c0_21], %35 {strides = array<i32>} : memref<8x32xf32, #tpu.memory_space<vmem>>, vector<8x32xf32>,
    return
  }
  func.func @transform_0(%arg0: i32) -> (i32, i32) {
    %c0_i32 = arith.constant 0 : i32
    %c0_i32_0 = arith.constant 0 : i32
    return %arg0, %c0_i32 : i32, i32
  }
  func.func @transform_1(%arg0: i32) -> (i32, i32) {
    %c0_i32 = arith.constant 0 : i32
    %c0_i32_0 = arith.constant 0 : i32
    %c0_i32_1 = arith.constant 0 : i32
    return %c0_i32, %c0_i32_0 : i32, i32
  }
  func.func @transform_2(%arg0: i32) -> (i32, i32) {
    %c0_i32 = arith.constant 0 : i32
    %c0_i32_0 = arith.constant 0 : i32
    %c0_i32_1 = arith.constant 0 : i32
    return %c0_i32, %c0_i32_0 : i32, i32
  }
  func.func @transform_3(%arg0: i32) -> (i32, i32) {
    %c0_i32 = arith.constant 0 : i32
    %c0_i32_0 = arith.constant 0 : i32
    %c0_i32_1 = arith.constant 0 : i32
    return %c0_i32, %c0_i32_0 : i32, i32
  }
  func.func @transform_4(%arg0: i32) -> (i32, i32) {
    %c0_i32 = arith.constant 0 : i32
    %c0_i32_0 = arith.constant 0 : i32
    %c0_i32_1 = arith.constant 0 : i32
    return %c0_i32, %c0_i32_0 : i32, i32
  }
  func.func @transform_5(%arg0: i32) -> (i32, i32) {
    %c0_i32 = arith.constant 0 : i32
    %c0_i32_0 = arith.constant 0 : i32
    %c0_i32_1 = arith.constant 0 : i32
    return %c0_i32, %c0_i32_0 : i32, i32
  }
  func.func @transform_6(%arg0: i32) -> (i32, i32) {
    %c0_i32 = arith.constant 0 : i32
    %c0_i32_0 = arith.constant 0 : i32
    %c0_i32_1 = arith.constant 0 : i32
    return %c0_i32, %c0_i32_0 : i32, i32
  }
  func.func @transform_7(%arg0: i32) -> (i32, i32) {
    %c0_i32 = arith.constant 0 : i32
    %c0_i32_0 = arith.constant 0 : i32
    return %arg0, %c0_i32 : i32, i32
  }
}

</mosaic_0001>

<bundles_post_ra>
// kernel: tpu_custom_call.1
= control target key start
LH: loop header
LB: loop body
LE: loop exit
PB: predicated region body
PF: predicated region fallthrough
CT: control target
= control target key end

     0   :  { %12 = vsyncpa [#allocation3], 0  ;;  %s937_s0 = inlined_call_operand.vmem [shape: f32[16,32], index: 0, kind: input, shape index: {}]   ;;  %s938_s1 = inlined_call_operand.vmem [shape: f32[32,64], index: 1, kind: input, shape index: {}]   ;;  %s939_s2 = inlined_call_operand.vmem [shape: f32[1,64], index: 2, kind: input, shape index: {}]   ;;  %s940_s3 = inlined_call_operand.vmem [shape: f32[64,32], index: 3, kind: input, shape index: {}]   ;;  %s941_s4 = inlined_call_operand.vmem [shape: f32[1,32], index: 4, kind: input, shape index: {}]   ;;  %s942_s5 = inlined_call_operand.vmem [shape: f32[1,32], index: 5, kind: input, shape index: {}]   ;;  %s943_s6 = inlined_call_operand.vmem [shape: f32[1,32], index: 6, kind: input, shape index: {}]   ;;  %s944_s7 = inlined_call_operand.hbm [shape: f32[16,32], index: 7, kind: output, shape index: {}]  }
   0x1   :  { %14 = vsyncpa [#allocation3 + $0x1], 0  ;;  %s785_s24 = smov 0   ;;  %s787_s25 = smov 0  }
   0x2   :  { %s789_s26 = smov 0   ;;  %s791_s27 = smov 0  }
   0x3 LB: > { %s806_s28 = sadd.s32 4294967295, %s739_s27   ;;  %s555_s29 = sadd.s32 4294967294, %s739_s27   ;;  %s739_s27 = sphi %s791_s27, %s950_s27   ;;  %s735_s26 = sphi %s789_s26, %s949_s26   ;;  %s731_s25 = sphi %s787_s25, %s948_s25   ;;  %s727_s24 = sphi %s785_s24, %s947_s24  }
   0x4   : > { %s810_s30 = sadd.s32 1, %s739_s27   ;;  %s179_s8 = sadd.s32 1, %s735_s26 }
   0x5   : > { %s176_s9 = ssub.s32 %s739_s27, %s810_s30  ;;  %p189_p0 = scmp.ne.s32.totalorder %s735_s26, %s731_s25 }
   0x6   : > { %p177_p1 = scmp.eq.s32.totalorder %s176_s9, 0  ;;  %p190_p2 = scmp.eq.s32.totalorder %s806_s28, 1 }
   0x7   : > { %p195_p3 = scmp.ne.s32.totalorder %s731_s25, %s727_s24  ;;  %p196_p4 = scmp.eq.s32.totalorder %s555_s29, 1 }
   0x8   : > { %s821_s10 = scalar_select %p177_p1, %s735_s26, %s179_s8  }
   0x9   : > { %p823_p5 = por %p190_p2, %p189_p0  ;;  %p827_p6 = por %p196_p4, %p195_p3 }
   0xa   : > { %p558_p7 = scmp.ge.s32.totalorder %s739_s27, 1  ;;  %p239_p8 = scmp.lt.s32.totalorder %s739_s27, 3 }
   0xc   : > { %p240_p9 = pnand %p558_p7, %p239_p8 }
   0xd   : > { %v275_v0 = vld [vmem:[%s938_s1] sm:$0xff] (!%p240_p9)  ;;  %v276_v1 = vld [vmem:[%s938_s1 + $0x8] sm:$0xff] (!%p240_p9)  ;;  %v277_v2 = vld [vmem:[%s938_s1 + $0x10] sm:$0xff] (!%p240_p9)  ;;  %v741_v3 = vmov (!%p240_p9), 0.0|0.0   ;;  %vm742_vm0 = vmmov (!%p240_p9), 0   ;;  %v743_v6 = vmov (!%p240_p9), 0.0  }
   0xe   : > { %243 = sbr.rel (%p240_p9) target bundleno = 785 (0x311), region = 48  ;;  %615 = vmatprep.subr.bf16.mxu0 (!%p240_p9), %v741_v3  ;;  %v616_v4 = vpack.c.bf16 (!%p240_p9), %v276_v1, %v275_v0  ;;  %v278_v5 = vld [vmem:[%s938_s1 + $0x18] sm:$0xff] (!%p240_p9)  ;;  %593 = vmatprep.mubr.msk.f32.mxu0 (!%p240_p9), %vm742_vm0, %v743_v6  ;;  %p270_p10 = scmp.lt.s32.totalorder (!%p240_p9), %s806_s28, 1  ;;  %v361_v7 = vld [vmem:[%s940_s3] sm:$0xff] (!%p240_p9)  ;;  %v362_v8 = vld [vmem:[%s940_s3 + $0x8] sm:$0xff] (!%p240_p9)  ;;  %vm286_vm1 = vcmask (!%p240_p9), 261120  }
   0xf   : > { %621 = vmatprep.subr.bf16.mxu1 (!%p240_p9), %v741_v3  ;;  %v622_v9 = vpack.c.bf16 (!%p240_p9), %v362_v8, %v361_v7  ;;  %v363_v10 = vld [vmem:[%s940_s3 + $0x10] sm:$0xff] (!%p240_p9)  ;;  %v364_v11 = vld [vmem:[%s940_s3 + $0x18] sm:$0xff] (!%p240_p9)  ;;  %612 = vmatprep.mubr.msk.f32.mxu1 (!%p240_p9), %vm742_vm0, %v743_v6  ;;  %v619_v12 = vpack.c.bf16 (!%p240_p9), %v278_v5, %v277_v2  ;;  %v365_v14 = vld [vmem:[%s940_s3 + $0x20] sm:$0xff] (!%p240_p9)  ;;  %vm376_vm2 = vcmask (!%p240_p9), 523264   ;;  %s267_s18 = sand.u32 (!%p240_p9), 1, %s731_s25   ;;  %s568_s29 = sshll.u32 (!%p240_p9), %s806_s28, 7 }
  0x10   : > { %617 = vmatpush3.bf16.msra.mxu0 (!%p240_p9), %v616_v4  ;;  %v625_v13 = vpack.c.bf16 (!%p240_p9), %v364_v11, %v363_v10  ;;  %v366_v15 = vld [vmem:[%s940_s3 + $0x28] sm:$0xff] (!%p240_p9)  ;;  %v367_v18 = vld [vmem:[%s940_s3 + $0x30] sm:$0xff] (!%p240_p9)  ;;  %v368_v19 = vld [vmem:[%s940_s3 + $0x38] sm:$0xff] (!%p240_p9)  ;;  %s559_s19 = sshll.u32 (!%p240_p9), %s267_s18, 3 }
  0x11   : > { %618 = vmatprep.subr.bf16.mxu0 (!%p240_p9), %v741_v3  ;;  %623 = vmatpush3.bf16.msra.mxu1 (!%p240_p9), %v622_v9  ;;  %v628_v17 = vpack.c.bf16 (!%p240_p9), %v366_v15, %v365_v14  ;;  %v631_v20 = vpack.c.bf16 (!%p240_p9), %v368_v19, %v367_v18  ;;  %v561_v21 = vld [vmem:[%s939_s2] ss:$0 sm:$0xff] (!%p240_p9)  ;;  %s269_s8 = scalar_lea.vmem (!%p240_p9), [#allocation2], %s559_s19 }
  0x12   : > { %624 = vmatprep.subr.bf16.mxu1 (!%p240_p9), %v741_v3  ;;  %v563_v26 = vld [vmem:[%s941_s4] ss:$0 sm:$0xff] (!%p240_p9)  ;;  %s496_s9 = sshll.u32 (!%p240_p9), %s269_s8, 4  ;;  %s896_s9 = int_to_ptr.vmem [resolvable:$true] %s496_s9 }
  0x13   : > { %v565_v41 = vld [vmem:[%s942_s5] ss:$0 sm:$0xff] (!%p240_p9)  ;;  %s677_s17 = scalar_lea.vmem (!%p240_p9), %s896_s9, 128 }
  0x14   : > { %620 = vmatpush3.bf16.msra.mxu0 (!%p240_p9), %v619_v12  ;;  %v566_v43 = vld [vmem:[%s943_s6] ss:$0 sm:$0xff] (!%p240_p9)  ;;  %p678_p11 = scmp.ne.s32.totalorder (!%p240_p9), %s896_s9, %s677_s17 }
  0x15   : > { %s271_s15 = scalar_select %p270_p10, %s806_s28, 1  ;;  %626 = vmatpush3.bf16.msra.mxu1 %v625_v13 }
  0x16   : > { %627 = vmatprep.subr.bf16.mxu1 %v741_v3  ;;  %p679_p12 = pnand %p678_p11, %p823_p5  ;;  %s744_s28 = smov [#allocation2]  }
  0x17   : > { %s560_s16 = sshll.u32 %s271_s15, 3  ;;  %s894_s15 = scalar_lea.hbm %s944_s7, %s568_s29 }
  0x18   : > { %s273_s23 = scalar_lea.vmem %s937_s0, %s560_s16  ;;  %s483_s16 = scalar_lea.sflag [#allocation3], %s267_s18 }
  0x19   : > { %v274_v16 = vld [vmem:[%s273_s23] sm:$0xff]  ;;  %629 = vmatpush3.bf16.msra.mxu1 %v628_v17  ;;  %p680_p13 = pneg %p679_p12  ;;  %s681_s19 = sshll.u32 %s744_s28, 4  ;;  %s682_s19 = int_to_ptr.vmem [resolvable:$false] %s681_s19 }
  0x1a   : > { %594 = vmatmul.mubr.msk.f32.vlgmr.msra.gmra.mrb[0].mxu0 %vm286_vm1, %v274_v16  ;;  %630 = vmatprep.subr.bf16.mxu1 %v741_v3  ;;  %s683_s20 = scalar_lea.vmem %s682_s19, 256  ;;  %p684_p0 = scmp.lt.s32.totalorder %s896_s9, %s682_s19 }
  0x1b   : > { %p685_p1 = scmp.lt.s32.totalorder %s683_s20, %s677_s17 }
  0x1d   : > { %632 = vmatpush3.bf16.msra.mxu1 %v631_v20  ;;  %p686_p2 = por %p685_p1, %p684_p0 }
  0x1f   : > { %p687_p3 = pnand %p686_p2, %p680_p13 }
  0xed   : > { %v356_v22 = vpop.f32.mrb[0].mxu0 }
  0xee   : > { %v357_v23 = vadd.f32 %v561_v21, %v356_v22  ;;  %v595_v24 = vpop.f32.mrb[1].mxu0 }
  0xf0   : > { %v360_v25 = vmax.f32 %v357_v23, 0.0 }
  0xf2   : > { %613 = vmatmul.mubr.msk.f32.vlgmr.msra.gmra.mrb[0].mxu1 %vm376_vm2, %v360_v25 }
 0x1c5   : > { %v446_v27 = vpop.f32.mrb[0].mxu1 }
 0x1c6   : > { %v447_v28 = vadd.f32 %v563_v26, %v446_v27  ;;  %v614_v29 = vpop.f32.mrb[1].mxu1 }
 0x1c8   : > { %v450_v30 = vadd.f32 %v447_v28, %v274_v16 }
 0x1ca   : > { %v451_v31 = vsel %vm286_vm1, %v450_v30, 0.0 }
 0x1cb   : > { %452 = vadd.xlane.f32.xlu0 %v451_v31 }
 0x258   : > { %v453_v32 = vpop.xlane.xlu0 %452 }
 0x259   : > { %v455_v33 = vmul.f32 0.03125, %v453_v32 }
 0x25b   : > { %v456_v34 = vsub.f32 %v450_v30, %v455_v33 }
 0x25d   : > { %v457_v35 = vmul.f32 %v456_v34, %v456_v34 }
 0x25f   : > { %v458_v36 = vsel %vm286_vm1, %v457_v35, 0.0 }
 0x260   : > { %459 = vadd.xlane.f32.xlu0 %v458_v36 }
 0x2ed   : > { %v460_v37 = vpop.xlane.xlu0 %459 }
 0x2ee   : > { %v461_v38 = vmul.f32 0.03125, %v460_v37 }
 0x2f0   : > { %v462_v39 = vadd.f32 1e-05, %v461_v38 }
 0x2f2   : > { %675 = vrsqrt.f32 %v462_v39 }
 0x2fc   : > { %v676_v40 = vpop.eup %675 }
 0x2fd   : > { %v464_v42 = vmul.f32 %v676_v40, %v456_v34 }
 0x2ff   : > { %v472_v44 = vmul.f32 %v565_v41, %v464_v42 }
 0x301   : > { %v480_v45 = vadd.f32 %v566_v43, %v472_v44 }
 0x303   : > { %481 = vst.msk [vmem:[%s269_s8] sm:$0xff] %vm286_vm1, %v480_v45 }
 0x304   : > { %690 = shalt.err (!%p687_p3)
}
 0x305   : > { %s691_s18 = scalar_lea.hbm %s894_s15, 128  ;;  %s695_s23 = scalar_lea.hbm %s944_s7, 256 }
 0x306   : > { %p692_p4 = scmp.ne.s32.totalorder %s894_s15, %s691_s18  ;;  %p696_p9 = scmp.lt.u32.totalorder %s894_s15, %s944_s7 }
 0x307   : > { %p697_p10 = scmp.lt.u32.totalorder %s695_s23, %s691_s18  ;;  %p699_p12 = scmp.lt.u32.totalorder %s691_s18, %s894_s15 }
 0x308   : > { %p693_p7 = pnand %p692_p4, %p823_p5 }
 0x309   : > { %p698_p11 = por %p697_p10, %p696_p9 }
 0x30a   : > { %p694_p8 = pneg %p693_p7 }
 0x30b   : > { %p700_p13 = por %p699_p12, %p698_p11 }
 0x30d   : > { %p701_p0 = pnand %p700_p13, %p694_p8 }
 0x30f   : > { %704 = shalt.err (!%p701_p0)
}
 0x310   : > { %633 = dma.vmem_to_hbm [thread:$0]  (%p823_p5), %s896_s9, 128, %s894_s15, %s483_s16  }
 0x311 PF: > { %p639_p1 = scmp.ge.s32.totalorder %s739_s27, 2  ;;  %s508_s13 = sand.u32 1, %s727_s24  }
 0x312   : > { %s509_s14 = scalar_lea.sflag [#allocation3], %s508_s13 }
 0x313   : > { %p636_p2 = pnand %p639_p1, %p827_p6 }
 0x315   : > { %722 = dma.done.wait (!%p636_p2), %s509_s14, 128  }
 0x316   : > { %724 = vsyncadd (!%p636_p2), %s509_s14, 4294967168  ;;  %p17_p3 = scmp.ge.s32.totalorder %s810_s30, 4   ;;  %s947_s24 = smov %s731_s25 }
 0x317   : > { %s948_s25 = smov %s735_s26  ;;  %s949_s26 = smov %s821_s10 }
 0x318   : > { %s950_s27 = smov %s810_s30  ;;  %19 = sbr.rel (!%p17_p3) target bundleno = 3 (0x3), region = 83 }
 0x31f   :  { %514 = vsyncpa [#allocation3], 1 }
 0x320   :  { %516 = vsyncpa [#allocation3 + $0x1], 1 }

</bundles_post_ra>
